<compile_context>
chip_gen: v5e
topology: v5e:2x2
jax: 0.10.0
libtpu: 0.0.40
codegen_flags: <defaults>
</compile_context>

<pallas_src>
import jax
import jax.numpy as jnp
from jax.experimental import pallas as pl
from jax.experimental.pallas import tpu as pltpu

NEG_SLOPE = 0.01   # torch.nn.LeakyReLU default negative_slope
BN_EPS = 1e-5      # torch.nn.BatchNorm1d default eps
LANE = 128


def _round_up(n, m):
    return (n + m - 1) // m * m


def _cdiv(a, b):
    return -(-a // b)


def _leaky_relu(x):
    return jnp.where(x >= 0, x, NEG_SLOPE * x)


# --------------------------------------------------------------------------- #
# Kernel
# --------------------------------------------------------------------------- #
def vae_forward_kernel(slab_ref, bias_ref,
                       w_in, w_enc2, w_head, w_dec1, w_dec2, w_dec3o, w_heado,
                       out_ref):
    Hp = w_in.shape[1]
    Lp2 = w_head.shape[1]
    Lp = Lp2 // 2
    OUT_W = out_ref.shape[1]

    def dense(h, w_ref, bias_row, width, activate):
        # bf16 x bf16 -> f32 on the MXU; bias add / LeakyReLU stay in f32 (VPU).
        y = jnp.dot(h.astype(jnp.bfloat16), w_ref[...],
                    preferred_element_type=jnp.float32)
        y = y + bias_ref[bias_row:bias_row + 1, 0:width]
        return _leaky_relu(y) if activate else y

    slab = slab_ref[...]                     # bf16 packed input: [eps | x | pad]

    # ----- encoder (BN1/BN2 folded into the linears; eps rows of w_in are 0) --
    h = dense(slab, w_in, 0, Hp, True)
    # TODO(synk): Dropout(0.1) is identity here (eval mode); training-mode mask not implemented.
    h = dense(h, w_enc2, 1, Hp, True)
    h_bf = h.astype(jnp.bfloat16)            # reused for head + packed-output head

    # ----- enc3 precomposed into the fused mu | logvar head -------------------
    mulv = jnp.dot(h_bf, w_head[...], preferred_element_type=jnp.float32)
    mulv = mulv + bias_ref[2:3, 0:Lp2]
    mu = mulv[:, :Lp]
    logvar = mulv[:, Lp:]

    # ----- reparameterize ------------------------------------------------------
    # eps sits at lanes 0:latent of the slab; the garbage in padded z lanes is
    # annihilated by the zero rows of w_dec1.
    eps = slab[:, 0:Lp].astype(jnp.float32)
    z = mu + eps * jnp.exp(0.5 * logvar)

    # ----- decoder -------------------------------------------------------------
    d = dense(z, w_dec1, 3, Hp, True)
    d = dense(d, w_dec2, 4, Hp, True)

    # ----- packed lane-dense output slab: [rec | mu | logvar | pad] ------------
    out = jnp.dot(d.astype(jnp.bfloat16), w_dec3o[...],
                  preferred_element_type=jnp.float32)
    out = out + jnp.dot(h_bf, w_heado[...], preferred_element_type=jnp.float32)
    out_ref[...] = out + bias_ref[5:6, 0:OUT_W]


# --------------------------------------------------------------------------- #
# Parameter init (PyTorch-style) and packing (BN fold, enc3 fold, padding)
# --------------------------------------------------------------------------- #
def init_params(key, num_dofs, latent_dim, hidden_dim):
    """Linear weights stored transposed [in_features, out_features];
    1-D params stored as [1, D]."""
    params = {}

    def linear(k, fan_in, fan_out, name):
        kw, kb = jax.random.split(k)
        bound = 1.0 / jnp.sqrt(float(fan_in))
        params[name + "_w"] = jax.random.uniform(
            kw, (fan_in, fan_out), jnp.float32, -bound, bound)
        params[name + "_b"] = jax.random.uniform(
            kb, (1, fan_out), jnp.float32, -bound, bound)

    def batchnorm(dim, name):
        params[name + "_g"] = jnp.ones((1, dim), jnp.float32)
        params[name + "_b"] = jnp.zeros((1, dim), jnp.float32)
        params[name + "_m"] = jnp.zeros((1, dim), jnp.float32)   # running_mean
        params[name + "_v"] = jnp.ones((1, dim), jnp.float32)    # running_var

    keys = jax.random.split(key, 8)
    batchnorm(num_dofs, "bn1")
    linear(keys[0], num_dofs, hidden_dim, "enc1")
    batchnorm(hidden_dim, "bn2")
    linear(keys[1], hidden_dim, hidden_dim, "enc2")
    linear(keys[2], hidden_dim, hidden_dim, "enc3")
    linear(keys[3], hidden_dim, latent_dim, "mu")
    linear(keys[4], hidden_dim, latent_dim, "lv")
    linear(keys[5], latent_dim, hidden_dim, "dec1")
    linear(keys[6], hidden_dim, hidden_dim, "dec2")
    linear(keys[7], hidden_dim, num_dofs, "dec3")
    return params


def pack_params(p, num_dofs, latent_dim, hidden_dim):
    D, L, H = num_dofs, latent_dim, hidden_dim
    Lp = _round_up(L, LANE)
    Hp = _round_up(H, LANE)
    IN_W = _round_up(L + D, LANE)        # packed input slab:  [eps | x | pad]
    OUT_W = _round_up(D + 2 * L, LANE)   # packed output slab: [rec | mu | logvar | pad]
    HI = jax.lax.Precision.HIGHEST

    def fold_bn(g, b, m, v, w, bias):
        # BN(x) = x*scale + shift  =>  BN(x)@W + b = x@(scale.T*W) + (shift@W + b)
        scale = g * jax.lax.rsqrt(v + BN_EPS)   # (1, in)
        shift = b - m * scale                    # (1, in)
        return w * scale.T, bias + jnp.dot(shift, w, precision=HI)

    w1, b1 = fold_bn(p["bn1_g"], p["bn1_b"], p["bn1_m"], p["bn1_v"],
                     p["enc1_w"], p["enc1_b"])
    w2, b2 = fold_bn(p["bn2_g"], p["bn2_b"], p["bn2_m"], p["bn2_v"],
                     p["enc2_w"], p["enc2_b"])

    # enc3 composed into the mu / logvar head (no nonlinearity in between).
    mu_w_c = jnp.dot(p["enc3_w"], p["mu_w"], precision=HI)               # (H, L)
    lv_w_c = jnp.dot(p["enc3_w"], p["lv_w"], precision=HI)
    mu_b_c = jnp.dot(p["enc3_b"], p["mu_w"], precision=HI) + p["mu_b"]   # (1, L)
    lv_b_c = jnp.dot(p["enc3_b"], p["lv_w"], precision=HI) + p["lv_b"]

    # enc1 (BN1 folded) acting on the packed [eps | x] slab: eps rows are zero.
    w_in = jnp.zeros((IN_W, Hp), jnp.float32).at[L:L + D, :H].set(w1)
    w_enc2 = jnp.zeros((Hp, Hp), jnp.float32).at[:H, :H].set(w2)
    # head for reparameterization, per-128-block layout: [mu-block | logvar-block]
    w_head = (jnp.zeros((Hp, 2 * Lp), jnp.float32)
              .at[:H, :L].set(mu_w_c)
              .at[:H, Lp:Lp + L].set(lv_w_c))
    w_dec1 = jnp.zeros((Lp, Hp), jnp.float32).at[:L, :H].set(p["dec1_w"])
    w_dec2 = jnp.zeros((Hp, Hp), jnp.float32).at[:H, :H].set(p["dec2_w"])
    # packed-output contributions: rec from decoder, mu|logvar from encoder tail
    w_dec3o = jnp.zeros((Hp, OUT_W), jnp.float32).at[:H, :D].set(p["dec3_w"])
    w_heado = (jnp.zeros((Hp, OUT_W), jnp.float32)
               .at[:H, D:D + L].set(mu_w_c)
               .at[:H, D + L:D + 2 * L].set(lv_w_c))

    weights = tuple(w.astype(jnp.bfloat16)
                    for w in (w_in, w_enc2, w_head, w_dec1, w_dec2, w_dec3o, w_heado))

    wmax = max(Hp, 2 * Lp, OUT_W)
    bias_pack = (jnp.zeros((8, wmax), jnp.float32)
                 .at[0, :H].set(b1[0])
                 .at[1, :H].set(b2[0])
                 .at[2, :L].set(mu_b_c[0])
                 .at[2, Lp:Lp + L].set(lv_b_c[0])
                 .at[3, :H].set(p["dec1_b"][0])
                 .at[4, :H].set(p["dec2_b"][0])
                 .at[5, :D].set(p["dec3_b"][0])
                 .at[5, D:D + L].set(mu_b_c[0])
                 .at[5, D + L:D + 2 * L].set(lv_b_c[0]))

    return {"weights": weights, "bias_pack": bias_pack,
            "dims": (D, L, H, Lp, Hp, IN_W, OUT_W)}


# --------------------------------------------------------------------------- #
# Wrapper
# --------------------------------------------------------------------------- #
def biomech_prior_vae_forward(x, eps, packed, *, batch_tile=1024):
    D, L, H, Lp, Hp, IN_W, OUT_W = packed["dims"]
    weights = packed["weights"]
    bias_pack = packed["bias_pack"]

    B = x.shape[0]
    if B <= batch_tile:
        tb = _round_up(B, 8)                     # single tile, block == full array
    else:
        n_tiles = _cdiv(B, batch_tile)           # avoid a mostly-padding last tile
        tb = _round_up(_cdiv(B, n_tiles), 16)
    Bp = _round_up(B, tb)

    # one packed lane-dense bf16 input slab: [eps | x | 0-pad]
    slab = jnp.concatenate([eps, x], axis=1).astype(jnp.bfloat16)
    slab = jnp.pad(slab, ((0, Bp - B), (0, IN_W - (L + D))))

    def batch_spec(shape):
        return pl.BlockSpec(shape, lambda i: (i, 0))

    def resident(a):
        return pl.BlockSpec(a.shape, lambda i: (0, 0))   # constant block index -> DMA'd once

    in_specs = [batch_spec((tb, IN_W)), resident(bias_pack)]
    in_specs += [resident(w) for w in weights]

    out = pl.pallas_call(
        vae_forward_kernel,
        grid=(Bp // tb,),
        in_specs=in_specs,
        out_specs=batch_spec((tb, OUT_W)),
        out_shape=jax.ShapeDtypeStruct((Bp, OUT_W), jnp.float32),
        compiler_params=pltpu.CompilerParams(
            dimension_semantics=("parallel",),           # batch tiles are independent
            vmem_limit_bytes=32 * 1024 * 1024),
    )(slab, bias_pack, *weights)

    rec = out[:B, 0:D]
    mu = out[:B, D:D + L]
    logvar = out[:B, D + L:D + 2 * L]
    return rec, mu, logvar


# --------------------------------------------------------------------------- #
# Pure-JAX reference (mirrors the kernel's bf16 matmuls / bf16-rounded inputs)
# --------------------------------------------------------------------------- #
def _reference_forward(x, eps, p):
    def bn(h, n):
        return (h - p[n + "_m"]) * jax.lax.rsqrt(p[n + "_v"] + BN_EPS) * p[n + "_g"] + p[n + "_b"]

    def lrelu(h):
        return jnp.where(h >= 0, h, NEG_SLOPE * h)

    def mm(h, w):
        return jnp.dot(h.astype(jnp.bfloat16), w.astype(jnp.bfloat16),
                       preferred_element_type=jnp.float32)

    # kernel receives x / eps rounded to bf16 inside the packed input slab
    x = x.astype(jnp.bfloat16).astype(jnp.float32)
    eps = eps.astype(jnp.bfloat16).astype(jnp.float32)

    h = bn(x, "bn1")
    h = lrelu(mm(h, p["enc1_w"]) + p["enc1_b"])
    h = bn(h, "bn2")
    h = lrelu(mm(h, p["enc2_w"]) + p["enc2_b"])
    h = mm(h, p["enc3_w"]) + p["enc3_b"]
    mu = mm(h, p["mu_w"]) + p["mu_b"]
    logvar = mm(h, p["lv_w"]) + p["lv_b"]
    z = mu + eps * jnp.exp(0.5 * logvar)
    d = lrelu(mm(z, p["dec1_w"]) + p["dec1_b"])
    d = lrelu(mm(d, p["dec2_w"]) + p["dec2_b"])
    rec = mm(d, p["dec3_w"]) + p["dec3_b"]
    return rec, mu, logvar


if __name__ == "__main__":
    # small, forward-consistent shapes
    B, NUM_DOFS, LATENT_DIM, HIDDEN_DIM = 8, 24, 8, 128

    key = jax.random.PRNGKey(0)
    k_params, k_x, k_eps = jax.random.split(key, 3)

    params = init_params(k_params, NUM_DOFS, LATENT_DIM, HIDDEN_DIM)
    packed = pack_params(params, NUM_DOFS, LATENT_DIM, HIDDEN_DIM)

    x = jax.random.normal(k_x, (B, NUM_DOFS), jnp.float32)
    eps = jax.random.normal(k_eps, (B, LATENT_DIM), jnp.float32)  # torch.randn_like(std)

    rec, mu, logvar = biomech_prior_vae_forward(x, eps, packed)
    jax.block_until_ready((rec, mu, logvar))

    rec_r, mu_r, lv_r = _reference_forward(x, eps, params)
    assert rec.shape == (B, NUM_DOFS)
    assert mu.shape == (B, LATENT_DIM) and logvar.shape == (B, LATENT_DIM)
    # bf16 matmuls + BN / enc3-head folds change rounding slightly vs the reference.
    assert jnp.allclose(rec, rec_r, atol=3e-2, rtol=3e-2)
    assert jnp.allclose(mu, mu_r, atol=3e-2, rtol=3e-2)
    assert jnp.allclose(logvar, lv_r, atol=3e-2, rtol=3e-2)

    print("KERNEL_OK")
</pallas_src>

<mosaic_0001>
module attributes {stable_mosaic.version = 11 : i64} {
  func.func @vae_forward_kernel(%arg0: i32, %arg1: memref<8x128xbf16, #tpu.memory_space<vmem>>, %arg2: memref<8x256xf32, #tpu.memory_space<vmem>>, %arg3: memref<128x128xbf16, #tpu.memory_space<vmem>>, %arg4: memref<128x128xbf16, #tpu.memory_space<vmem>>, %arg5: memref<128x256xbf16, #tpu.memory_space<vmem>>, %arg6: memref<128x128xbf16, #tpu.memory_space<vmem>>, %arg7: memref<128x128xbf16, #tpu.memory_space<vmem>>, %arg8: memref<128x128xbf16, #tpu.memory_space<vmem>>, %arg9: memref<128x128xbf16, #tpu.memory_space<vmem>>, %arg10: memref<8x128xf32, #tpu.memory_space<vmem>>) attributes {dimension_semantics = [#tpu.dimension_semantics<parallel>], iteration_bounds = array<i64: 1>, scalar_prefetch = 0 : i64, scratch_operands = 0 : i64, tpu.core_type = #tpu.core_type<tc>, window_params = [{transform_indices = @transform_0, window_bounds = array<i64: 8, 128>}, {pipeline_mode = #tpu.pipeline_mode<synchronous>, transform_indices = @transform_1, window_bounds = array<i64: 8, 256>}, {pipeline_mode = #tpu.pipeline_mode<synchronous>, transform_indices = @transform_2, window_bounds = array<i64: 128, 128>}, {pipeline_mode = #tpu.pipeline_mode<synchronous>, transform_indices = @transform_3, window_bounds = array<i64: 128, 128>}, {pipeline_mode = #tpu.pipeline_mode<synchronous>, transform_indices = @transform_4, window_bounds = array<i64: 128, 256>}, {pipeline_mode = #tpu.pipeline_mode<synchronous>, transform_indices = @transform_5, window_bounds = array<i64: 128, 128>}, {pipeline_mode = #tpu.pipeline_mode<synchronous>, transform_indices = @transform_6, window_bounds = array<i64: 128, 128>}, {pipeline_mode = #tpu.pipeline_mode<synchronous>, transform_indices = @transform_7, window_bounds = array<i64: 128, 128>}, {pipeline_mode = #tpu.pipeline_mode<synchronous>, transform_indices = @transform_8, window_bounds = array<i64: 128, 128>}, {transform_indices = @transform_9, window_bounds = array<i64: 8, 128>}]} {
    %c0 = arith.constant 0 : index
    %c0_0 = arith.constant 0 : index
    %0 = vector.load %arg1[%c0, %c0_0] : memref<8x128xbf16, #tpu.memory_space<vmem>>, vector<8x128xbf16>
    %c0_1 = arith.constant 0 : index
    %c0_2 = arith.constant 0 : index
    %1 = vector.load %arg3[%c0_1, %c0_2] : memref<128x128xbf16, #tpu.memory_space<vmem>>, vector<128x128xbf16>
    %cst = arith.constant dense<0.000000e+00> : vector<8x128xf32>
    %2 = tpu.matmul %0, %1, %cst {dimension_numbers = #tpu.dot_dimension_numbers<[1], [0], [0], [1], [0, 0, 1, 1], [], []>} : vector<8x128xbf16>, vector<128x128xbf16>, vector<8x128xf32> -> vector<8x128xf32>
    %c0_3 = arith.constant 0 : index
    %c0_4 = arith.constant 0 : index
    %3 = vector.load %arg2[%c0_3, %c0_4] : memref<8x256xf32, #tpu.memory_space<vmem>>, vector<1x128xf32>
    %4 = vector.broadcast %3 : vector<1x128xf32> to vector<8x128xf32>
    %5 = arith.addf %2, %4 : vector<8x128xf32>
    %cst_5 = arith.constant 0.000000e+00 : f32
    %6 = vector.broadcast %cst_5 : f32 to vector<8x128xf32>
    %7 = arith.cmpf oge, %5, %6 : vector<8x128xf32>
    %cst_6 = arith.constant 0.00999999977 : f32
    %8 = vector.broadcast %cst_6 : f32 to vector<8x128xf32>
    %9 = arith.mulf %8, %5 : vector<8x128xf32>
    %10 = arith.select %7, %5, %9 : vector<8x128xi1>, vector<8x128xf32>
    %11 = arith.truncf %10 : vector<8x128xf32> to vector<8x128xbf16>
    %c0_7 = arith.constant 0 : index
    %c0_8 = arith.constant 0 : index
    %12 = vector.load %arg4[%c0_7, %c0_8] : memref<128x128xbf16, #tpu.memory_space<vmem>>, vector<128x128xbf16>
    %cst_9 = arith.constant dense<0.000000e+00> : vector<8x128xf32>
    %13 = tpu.matmul %11, %12, %cst_9 {dimension_numbers = #tpu.dot_dimension_numbers<[1], [0], [0], [1], [0, 0, 1, 1], [], []>} : vector<8x128xbf16>, vector<128x128xbf16>, vector<8x128xf32> -> vector<8x128xf32>
    %c1 = arith.constant 1 : index
    %c0_10 = arith.constant 0 : index
    %14 = vector.load %arg2[%c1, %c0_10] : memref<8x256xf32, #tpu.memory_space<vmem>>, vector<1x128xf32>
    %15 = vector.broadcast %14 : vector<1x128xf32> to vector<8x128xf32>
    %16 = arith.addf %13, %15 : vector<8x128xf32>
    %cst_11 = arith.constant 0.000000e+00 : f32
    %17 = vector.broadcast %cst_11 : f32 to vector<8x128xf32>
    %18 = arith.cmpf oge, %16, %17 : vector<8x128xf32>
    %cst_12 = arith.constant 0.00999999977 : f32
    %19 = vector.broadcast %cst_12 : f32 to vector<8x128xf32>
    %20 = arith.mulf %19, %16 : vector<8x128xf32>
    %21 = arith.select %18, %16, %20 : vector<8x128xi1>, vector<8x128xf32>
    %22 = arith.truncf %21 : vector<8x128xf32> to vector<8x128xbf16>
    %c0_13 = arith.constant 0 : index
    %c0_14 = arith.constant 0 : index
    %23 = vector.load %arg5[%c0_13, %c0_14] : memref<128x256xbf16, #tpu.memory_space<vmem>>, vector<128x256xbf16>
    %cst_15 = arith.constant dense<0.000000e+00> : vector<8x256xf32>
    %24 = tpu.matmul %22, %23, %cst_15 {dimension_numbers = #tpu.dot_dimension_numbers<[1], [0], [0], [1], [0, 0, 1, 1], [], []>} : vector<8x128xbf16>, vector<128x256xbf16>, vector<8x256xf32> -> vector<8x256xf32>
    %c2 = arith.constant 2 : index
    %c0_16 = arith.constant 0 : index
    %25 = vector.load %arg2[%c2, %c0_16] : memref<8x256xf32, #tpu.memory_space<vmem>>, vector<1x256xf32>
    %26 = vector.broadcast %25 : vector<1x256xf32> to vector<8x256xf32>
    %27 = arith.addf %24, %26 : vector<8x256xf32>
    %28 = vector.extract_strided_slice %27 {offsets = [0, 0], sizes = [8, 128], strides = [1, 1]} : vector<8x256xf32> to vector<8x128xf32>
    %29 = vector.extract_strided_slice %27 {offsets = [0, 128], sizes = [8, 128], strides = [1, 1]} : vector<8x256xf32> to vector<8x128xf32>
    %30 = arith.extf %0 : vector<8x128xbf16> to vector<8x128xf32>
    %cst_17 = arith.constant 5.000000e-01 : f32
    %31 = vector.broadcast %cst_17 : f32 to vector<8x128xf32>
    %32 = arith.mulf %31, %29 : vector<8x128xf32>
    %33 = math.exp %32 : vector<8x128xf32>
    %34 = arith.mulf %30, %33 : vector<8x128xf32>
    %35 = arith.addf %28, %34 : vector<8x128xf32>
    %36 = arith.truncf %35 : vector<8x128xf32> to vector<8x128xbf16>
    %c0_18 = arith.constant 0 : index
    %c0_19 = arith.constant 0 : index
    %37 = vector.load %arg6[%c0_18, %c0_19] : memref<128x128xbf16, #tpu.memory_space<vmem>>, vector<128x128xbf16>
    %cst_20 = arith.constant dense<0.000000e+00> : vector<8x128xf32>
    %38 = tpu.matmul %36, %37, %cst_20 {dimension_numbers = #tpu.dot_dimension_numbers<[1], [0], [0], [1], [0, 0, 1, 1], [], []>} : vector<8x128xbf16>, vector<128x128xbf16>, vector<8x128xf32> -> vector<8x128xf32>
    %c3 = arith.constant 3 : index
    %c0_21 = arith.constant 0 : index
    %39 = vector.load %arg2[%c3, %c0_21] : memref<8x256xf32, #tpu.memory_space<vmem>>, vector<1x128xf32>
    %40 = vector.broadcast %39 : vector<1x128xf32> to vector<8x128xf32>
    %41 = arith.addf %38, %40 : vector<8x128xf32>
    %cst_22 = arith.constant 0.000000e+00 : f32
    %42 = vector.broadcast %cst_22 : f32 to vector<8x128xf32>
    %43 = arith.cmpf oge, %41, %42 : vector<8x128xf32>
    %cst_23 = arith.constant 0.00999999977 : f32
    %44 = vector.broadcast %cst_23 : f32 to vector<8x128xf32>
    %45 = arith.mulf %44, %41 : vector<8x128xf32>
    %46 = arith.select %43, %41, %45 : vector<8x128xi1>, vector<8x128xf32>
    %47 = arith.truncf %46 : vector<8x128xf32> to vector<8x128xbf16>
    %c0_24 = arith.constant 0 : index
    %c0_25 = arith.constant 0 : index
    %48 = vector.load %arg7[%c0_24, %c0_25] : memref<128x128xbf16, #tpu.memory_space<vmem>>, vector<128x128xbf16>
    %cst_26 = arith.constant dense<0.000000e+00> : vector<8x128xf32>
    %49 = tpu.matmul %47, %48, %cst_26 {dimension_numbers = #tpu.dot_dimension_numbers<[1], [0], [0], [1], [0, 0, 1, 1], [], []>} : vector<8x128xbf16>, vector<128x128xbf16>, vector<8x128xf32> -> vector<8x128xf32>
    %c4 = arith.constant 4 : index
    %c0_27 = arith.constant 0 : index
    %50 = vector.load %arg2[%c4, %c0_27] : memref<8x256xf32, #tpu.memory_space<vmem>>, vector<1x128xf32>
    %51 = vector.broadcast %50 : vector<1x128xf32> to vector<8x128xf32>
    %52 = arith.addf %49, %51 : vector<8x128xf32>
    %cst_28 = arith.constant 0.000000e+00 : f32
    %53 = vector.broadcast %cst_28 : f32 to vector<8x128xf32>
    %54 = arith.cmpf oge, %52, %53 : vector<8x128xf32>
    %cst_29 = arith.constant 0.00999999977 : f32
    %55 = vector.broadcast %cst_29 : f32 to vector<8x128xf32>
    %56 = arith.mulf %55, %52 : vector<8x128xf32>
    %57 = arith.select %54, %52, %56 : vector<8x128xi1>, vector<8x128xf32>
    %58 = arith.truncf %57 : vector<8x128xf32> to vector<8x128xbf16>
    %c0_30 = arith.constant 0 : index
    %c0_31 = arith.constant 0 : index
    %59 = vector.load %arg8[%c0_30, %c0_31] : memref<128x128xbf16, #tpu.memory_space<vmem>>, vector<128x128xbf16>
    %cst_32 = arith.constant dense<0.000000e+00> : vector<8x128xf32>
    %60 = tpu.matmul %58, %59, %cst_32 {dimension_numbers = #tpu.dot_dimension_numbers<[1], [0], [0], [1], [0, 0, 1, 1], [], []>} : vector<8x128xbf16>, vector<128x128xbf16>, vector<8x128xf32> -> vector<8x128xf32>
    %c0_33 = arith.constant 0 : index
    %c0_34 = arith.constant 0 : index
    %61 = vector.load %arg9[%c0_33, %c0_34] : memref<128x128xbf16, #tpu.memory_space<vmem>>, vector<128x128xbf16>
    %cst_35 = arith.constant dense<0.000000e+00> : vector<8x128xf32>
    %62 = tpu.matmul %22, %61, %cst_35 {dimension_numbers = #tpu.dot_dimension_numbers<[1], [0], [0], [1], [0, 0, 1, 1], [], []>} : vector<8x128xbf16>, vector<128x128xbf16>, vector<8x128xf32> -> vector<8x128xf32>
    %63 = arith.addf %60, %62 : vector<8x128xf32>
    %c5 = arith.constant 5 : index
    %c0_36 = arith.constant 0 : index
    %64 = vector.load %arg2[%c5, %c0_36] : memref<8x256xf32, #tpu.memory_space<vmem>>, vector<1x128xf32>
    %65 = vector.broadcast %64 : vector<1x128xf32> to vector<8x128xf32>
    %66 = arith.addf %63, %65 : vector<8x128xf32>
    %c0_37 = arith.constant 0 : index
    %c0_38 = arith.constant 0 : index
    %67 = vector.load %arg10[%c0_37, %c0_38] : memref<8x128xf32, #tpu.memory_space<vmem>>, vector<8x128xf32>
    tpu.vector_store %arg10[%c0_37, %c0_38], %66 {strides = array<i32>} : memref<8x128xf32, #tpu.memory_space<vmem>>, vector<8x128xf32>,
    return
  }
  func.func @transform_0(%arg0: i32) -> (i32, i32) {
    %c0_i32 = arith.constant 0 : i32
    %c0_i32_0 = arith.constant 0 : i32
    return %arg0, %c0_i32 : i32, i32
  }
  func.func @transform_1(%arg0: i32) -> (i32, i32) {
    %c0_i32 = arith.constant 0 : i32
    %c0_i32_0 = arith.constant 0 : i32
    %c0_i32_1 = arith.constant 0 : i32
    return %c0_i32, %c0_i32_0 : i32, i32
  }
  func.func @transform_2(%arg0: i32) -> (i32, i32) {
    %c0_i32 = arith.constant 0 : i32
    %c0_i32_0 = arith.constant 0 : i32
    %c0_i32_1 = arith.constant 0 : i32
    return %c0_i32, %c0_i32_0 : i32, i32
  }
  func.func @transform_3(%arg0: i32) -> (i32, i32) {
    %c0_i32 = arith.constant 0 : i32
    %c0_i32_0 = arith.constant 0 : i32
    %c0_i32_1 = arith.constant 0 : i32
    return %c0_i32, %c0_i32_0 : i32, i32
  }
  func.func @transform_4(%arg0: i32) -> (i32, i32) {
    %c0_i32 = arith.constant 0 : i32
    %c0_i32_0 = arith.constant 0 : i32
    %c0_i32_1 = arith.constant 0 : i32
    return %c0_i32, %c0_i32_0 : i32, i32
  }
  func.func @transform_5(%arg0: i32) -> (i32, i32) {
    %c0_i32 = arith.constant 0 : i32
    %c0_i32_0 = arith.constant 0 : i32
    %c0_i32_1 = arith.constant 0 : i32
    return %c0_i32, %c0_i32_0 : i32, i32
  }
  func.func @transform_6(%arg0: i32) -> (i32, i32) {
    %c0_i32 = arith.constant 0 : i32
    %c0_i32_0 = arith.constant 0 : i32
    %c0_i32_1 = arith.constant 0 : i32
    return %c0_i32, %c0_i32_0 : i32, i32
  }
  func.func @transform_7(%arg0: i32) -> (i32, i32) {
    %c0_i32 = arith.constant 0 : i32
    %c0_i32_0 = arith.constant 0 : i32
    %c0_i32_1 = arith.constant 0 : i32
    return %c0_i32, %c0_i32_0 : i32, i32
  }
  func.func @transform_8(%arg0: i32) -> (i32, i32) {
    %c0_i32 = arith.constant 0 : i32
    %c0_i32_0 = arith.constant 0 : i32
    %c0_i32_1 = arith.constant 0 : i32
    return %c0_i32, %c0_i32_0 : i32, i32
  }
  func.func @transform_9(%arg0: i32) -> (i32, i32) {
    %c0_i32 = arith.constant 0 : i32
    %c0_i32_0 = arith.constant 0 : i32
    return %arg0, %c0_i32 : i32, i32
  }
}

</mosaic_0001>

<bundles_post_ra>
// kernel: tpu_custom_call.1
= control target key start
LH: loop header
LB: loop body
LE: loop exit
PB: predicated region body
PF: predicated region fallthrough
CT: control target
= control target key end

     0   :  { %14 = vsyncpa [#allocation3], 0  ;;  %s1516_s0 = inlined_call_operand.hbm [shape: bf16[8,128], index: 0, kind: input, shape index: {}]   ;;  %s1517_s1 = inlined_call_operand.hbm [shape: f32[8,256], index: 1, kind: input, shape index: {}]   ;;  %s1518_s2 = inlined_call_operand.hbm [shape: bf16[128,128], index: 2, kind: input, shape index: {}]   ;;  %s1519_s3 = inlined_call_operand.hbm [shape: bf16[128,128], index: 3, kind: input, shape index: {}]   ;;  %s1520_s4 = inlined_call_operand.hbm [shape: bf16[128,256], index: 4, kind: input, shape index: {}]   ;;  %s1521_s5 = inlined_call_operand.hbm [shape: bf16[128,128], index: 5, kind: input, shape index: {}]   ;;  %s1522_s6 = inlined_call_operand.hbm [shape: bf16[128,128], index: 6, kind: input, shape index: {}]   ;;  %s1523_s7 = inlined_call_operand.hbm [shape: bf16[128,128], index: 7, kind: input, shape index: {}]   ;;  %s1524_s8 = inlined_call_operand.hbm [shape: bf16[128,128], index: 8, kind: input, shape index: {}]   ;;  %s1525_s9 = inlined_call_operand.hbm [shape: f32[8,128], index: 9, kind: output, shape index: {}]  }
   0x1   :  { %15 = vsyncpa [#allocation6], 0 }
   0x2   :  { %16 = vsyncpa [#allocation9], 0 }
   0x3   :  { %17 = vsyncpa [#allocation12], 0 }
   0x4   :  { %18 = vsyncpa [#allocation15], 0  ;;  %s36_s11 = sshll.u32 %s1517_s1, 4  ;;  %s37_s11 = int_to_ptr.hbm [resolvable:$true] %s36_s11 }
   0x5   :  { %19 = vsyncpa [#allocation4], 0  ;;  %s1400_s12 = smov [#allocation5]   ;;  %s59_s16 = sshll.u32 %s1519_s3, 4  ;;  %s60_s16 = int_to_ptr.hbm [resolvable:$true] %s59_s16 }
   0x6   :  { %s38_s13 = sshll.u32 %s1400_s12, 4  ;;  %s1401_s17 = smov [#allocation8]   ;;  %s39_s13 = int_to_ptr.vmem [resolvable:$true] %s38_s13 }
   0x7   :  { %41 = dma.hbm_to_vmem [thread:$0]  %s37_s11, 256, %s39_s13, [#allocation6]  }
   0x8   :  { %s61_s18 = sshll.u32 %s1401_s17, 4  ;;  %s85_s21 = sshll.u32 %s1521_s5, 4  ;;  %s62_s18 = int_to_ptr.vmem [resolvable:$true] %s61_s18  ;;  %s86_s21 = int_to_ptr.hbm [resolvable:$true] %s85_s21 }
   0x9   :  { %s1402_s1 = smov 64   ;;  %s1403_s22 = smov 4  }
   0xa   :  { %67 = dma.hbm_to_vmem [thread:$0]  %s60_s16, 1024, %s62_s18, [#allocation9], %s1402_s1, %s1402_s1, %s1403_s22  }
   0xb   :  { %s111_s25 = sshll.u32 %s1523_s7, 4  ;;  %s1404_s3 = smov [#allocation11]   ;;  %s112_s25 = int_to_ptr.hbm [resolvable:$true] %s111_s25 }
   0xc   :  { %s87_s26 = sshll.u32 %s1404_s3, 4  ;;  %s1405_s5 = smov [#allocation14]   ;;  %s88_s26 = int_to_ptr.vmem [resolvable:$true] %s87_s26 }
   0xd   :  { %93 = dma.hbm_to_vmem [thread:$0]  %s86_s21, 1024, %s88_s26, [#allocation12], %s1402_s1, %s1402_s1, %s1403_s22  }
   0xe   :  { %s113_s27 = sshll.u32 %s1405_s5, 4  ;;  %s25_s30 = sshll.u32 %s1516_s0, 4  ;;  %s114_s27 = int_to_ptr.vmem [resolvable:$true] %s113_s27  ;;  %s26_s30 = int_to_ptr.hbm [resolvable:$true] %s25_s30 }
   0xf   :  { %119 = dma.hbm_to_vmem [thread:$0]  %s112_s25, 1024, %s114_s27, [#allocation15], %s1402_s1, %s1402_s1, %s1403_s22  }
  0x10   :  { %s46_s11 = sshll.u32 %s1518_s2, 4  ;;  %s1406_s12 = smov [#allocation2]   ;;  %s47_s11 = int_to_ptr.hbm [resolvable:$true] %s46_s11 }
  0x11   :  { %s27_s13 = sshll.u32 %s1406_s12, 4  ;;  %s1407_s14 = smov [#allocation7]   ;;  %s28_s13 = int_to_ptr.vmem [resolvable:$true] %s27_s13 }
  0x12   :  { %30 = dma.hbm_to_vmem [thread:$0]  %s26_s30, 64, %s28_s13, [#allocation3]  }
  0x13   :  { %s48_s15 = sshll.u32 %s1407_s14, 4  ;;  %s72_s0 = sshll.u32 %s1520_s4, 4  ;;  %s49_s15 = int_to_ptr.vmem [resolvable:$true] %s48_s15  ;;  %s73_s0 = int_to_ptr.hbm [resolvable:$true] %s72_s0 }
  0x14   :  { %54 = dma.hbm_to_vmem [thread:$0]  %s47_s11, 1024, %s49_s15, [#allocation6], %s1402_s1, %s1402_s1, %s1403_s22  }
  0x15   :  { %s1408_s18 = smov [#allocation10]   ;;  %s98_s21 = sshll.u32 %s1522_s6, 4  ;;  %s99_s21 = int_to_ptr.hbm [resolvable:$true] %s98_s21 }
  0x16   :  { %s74_s19 = sshll.u32 %s1408_s18, 4  ;;  %s1409_s23 = smov 128   ;;  %s75_s19 = int_to_ptr.vmem [resolvable:$true] %s74_s19 }
  0x17   :  { %s1410_s24 = smov 8   ;;  %s1411_s25 = smov [#allocation13]  }
  0x18   :  { %80 = dma.hbm_to_vmem [thread:$0]  %s73_s0, 2048, %s75_s19, [#allocation9], %s1409_s23, %s1409_s23, %s1410_s24  }
  0x19   :  { %s100_s3 = sshll.u32 %s1411_s25, 4  ;;  %s124_s5 = sshll.u32 %s1524_s8, 4  ;;  %s101_s3 = int_to_ptr.vmem [resolvable:$true] %s100_s3  ;;  %s125_s5 = int_to_ptr.hbm [resolvable:$true] %s124_s5 }
  0x1a   :  { %106 = dma.hbm_to_vmem [thread:$0]  %s99_s21, 1024, %s101_s3, [#allocation12], %s1402_s1, %s1402_s1, %s1403_s22  }
  0x1b   :  { %s1412_s27 = smov [#allocation16]  }
  0x1c   :  { %s126_s28 = sshll.u32 %s1412_s27, 4  ;;  %s127_s28 = int_to_ptr.vmem [resolvable:$true] %s126_s28 }
  0x1d   :  { %132 = dma.hbm_to_vmem [thread:$0]  %s125_s5, 1024, %s127_s28, [#allocation15], %s1402_s1, %s1402_s1, %s1403_s22  }
  0x1e   :  { %1388 = dma.done.wait [#allocation3], 64  }
  0x1f   :  { %1389 = vsyncadd [#allocation3], 4294967232 }
  0x20   :  { %1390 = dma.done.wait [#allocation6], 1280  }
  0x21   :  { %1391 = vsyncadd [#allocation6], 4294966016 }
  0x22   :  { %1392 = dma.done.wait [#allocation9], 3072  }
  0x23   :  { %1393 = vsyncadd [#allocation9], 4294964224 }
  0x24   :  { %1394 = dma.done.wait [#allocation12], 2048  }
  0x25   :  { %1395 = vsyncadd [#allocation12], 4294965248 }
  0x26   :  { %1396 = dma.done.wait [#allocation15], 2048  }
  0x27   :  { %1397 = vsyncadd [#allocation15], 4294965248  ;;  %v1075_v0 = vld [vmem:[#allocation7 + $0x38] sm:$0xff]  ;;  %v1074_v1 = vld [vmem:[#allocation7 + $0x30] sm:$0xff]  ;;  %s1413_s6 = smov [#allocation17]   ;;  %s798_s29 = sshll.u32 %s1525_s9, 4  ;;  %s799_s29 = int_to_ptr.hbm [resolvable:$true] %s798_s29 }
  0x28   :  { %235 = vmatpush.bf16.msra.mxu0 %v1075_v0  ;;  %v1083_v2 = vld [vmem:[#allocation8 + $0x38] sm:$0xff]  ;;  %v1082_v3 = vld [vmem:[#allocation8 + $0x30] sm:$0xff]  ;;  %v1073_v4 = vld [vmem:[#allocation7 + $0x28] sm:$0xff]  ;;  %s796_s8 = sshll.u32 %s1413_s6, 4  ;;  %s797_s8 = int_to_ptr.vmem [resolvable:$true] %s796_s8 }
  0x29   :  { %317 = vmatpush.bf16.msra.mxu1 %v1083_v2  ;;  %v1081_v5 = vld [vmem:[#allocation8 + $0x28] sm:$0xff]  ;;  %v1072_v6 = vld [vmem:[#allocation7 + $0x20] sm:$0xff]  ;;  %v1071_v8 = vld [vmem:[#allocation7 + $0x18] sm:$0xff] }
  0x2a   :  { %v1080_v7 = vld [vmem:[#allocation8 + $0x20] sm:$0xff]  ;;  %v1079_v9 = vld [vmem:[#allocation8 + $0x18] sm:$0xff]  ;;  %v1070_v10 = vld [vmem:[#allocation7 + $0x10] sm:$0xff] }
  0x2b   :  { %v1078_v11 = vld [vmem:[#allocation8 + $0x10] sm:$0xff]  ;;  %v1069_v12 = vld [vmem:[#allocation7 + $0x8] sm:$0xff]  ;;  %v1068_v13 = vld [vmem:[#allocation7] sm:$0xff] }
  0x2c   :  { %236 = vmatpush.bf16.msra.mxu0 %v1074_v1  ;;  %v1509_v14 = vld [vmem:[#allocation2] sm:$0xf]  ;;  %v1076_v16 = vld [vmem:[#allocation8] sm:$0xff]  ;;  %v934_v17 = vld [vmem:[#allocation10 + $0x70] sm:$0xf] }
  0x2d   :  { %318 = vmatpush.bf16.msra.mxu1 %v1082_v3  ;;  %v1077_v15 = vld [vmem:[#allocation8 + $0x8] sm:$0xff]  ;;  %v1099_v18 = vld [vmem:[#allocation10 + $0x74] sm:$0xf0]  ;;  %v926_v19 = vld [vmem:[#allocation10 + $0x60] sm:$0xf] }
  0x2e   :  { %v935_v20 = vor.u32 %v1099_v18, %v934_v17  ;;  %v1097_v21 = vld [vmem:[#allocation10 + $0x64] sm:$0xf0]  ;;  %v1098_v22 = vld [vmem:[#allocation10 + $0x74] sm:$0xf]  ;;  %v918_v24 = vld [vmem:[#allocation10 + $0x50] sm:$0xf] }
  0x2f   :  { %v927_v23 = vor.u32 %v1097_v21, %v926_v19  ;;  %v936_v25 = vld [vmem:[#allocation10 + $0x78] sm:$0xf0]  ;;  %v1095_v26 = vld [vmem:[#allocation10 + $0x54] sm:$0xf0]  ;;  %v1096_v28 = vld [vmem:[#allocation10 + $0x64] sm:$0xf] }
  0x30   :  { %237 = vmatpush.bf16.msra.mxu0 %v1073_v4  ;;  %437 = vmatpush.bf16.msra.mxu2 %v935_v20  ;;  %v939_v27 = vor.u32 %v1098_v22, %v936_v25  ;;  %v928_v29 = vld [vmem:[#allocation10 + $0x68] sm:$0xf0]  ;;  %v919_v31 = vor.u32 %v1095_v26, %v918_v24  ;;  %v1094_v32 = vld [vmem:[#allocation10 + $0x54] sm:$0xf]  ;;  %v920_v33 = vld [vmem:[#allocation10 + $0x58] sm:$0xf0] }
  0x31   :  { %319 = vmatpush.bf16.msra.mxu1 %v1081_v5  ;;  %v931_v30 = vor.u32 %v1096_v28, %v928_v29  ;;  %v910_v34 = vld [vmem:[#allocation10 + $0x40] sm:$0xf]  ;;  %v1093_v35 = vld [vmem:[#allocation10 + $0x44] sm:$0xf0]  ;;  %v923_v36 = vor.u32 %v1094_v32, %v920_v33  ;;  %v1092_v38 = vld [vmem:[#allocation10 + $0x44] sm:$0xf] }
  0x32   :  { %450 = vmatpush.bf16.msra.mxu3 %v939_v27  ;;  %v911_v37 = vor.u32 %v1093_v35, %v910_v34  ;;  %v912_v39 = vld [vmem:[#allocation10 + $0x48] sm:$0xf0]  ;;  %v902_v40 = vld [vmem:[#allocation10 + $0x30] sm:$0xf]  ;;  %v1091_v41 = vld [vmem:[#allocation10 + $0x34] sm:$0xf0] }
  0x33   :  { %v915_v42 = vor.u32 %v1092_v38, %v912_v39  ;;  %v903_v43 = vor.u32 %v1091_v41, %v902_v40  ;;  %v1090_v44 = vld [vmem:[#allocation10 + $0x34] sm:$0xf]  ;;  %v904_v45 = vld [vmem:[#allocation10 + $0x38] sm:$0xf0]  ;;  %v894_v46 = vld [vmem:[#allocation10 + $0x20] sm:$0xf] }
  0x34   :  { %238 = vmatpush.bf16.msra.mxu0 %v1072_v6  ;;  %438 = vmatpush.bf16.msra.mxu2 %v927_v23  ;;  %v1089_v47 = vld [vmem:[#allocation10 + $0x24] sm:$0xf0]  ;;  %v907_v48 = vor.u32 %v1090_v44, %v904_v45  ;;  %v1088_v50 = vld [vmem:[#allocation10 + $0x24] sm:$0xf]  ;;  %v896_v51 = vld [vmem:[#allocation10 + $0x28] sm:$0xf0] }
  0x35   :  { %320 = vmatpush.bf16.msra.mxu1 %v1080_v7  ;;  %v895_v49 = vor.u32 %v1089_v47, %v894_v46  ;;  %v886_v52 = vld [vmem:[#allocation10 + $0x10] sm:$0xf]  ;;  %v1087_v53 = vld [vmem:[#allocation10 + $0x14] sm:$0xf0]  ;;  %v899_v55 = vor.u32 %v1088_v50, %v896_v51  ;;  %v878_v58 = vld [vmem:[#allocation10] sm:$0xf]  ;;  %v463_v46 = vunpack.c.l.bf16 %v1509_v14 }
  0x36   :  { %451 = vmatpush.bf16.msra.mxu3 %v931_v30  ;;  %v186_v54 = vld [vmem:[#allocation5] ss:$0 sm:$0xff]  ;;  %v887_v56 = vor.u32 %v1087_v53, %v886_v52  ;;  %v1085_v59 = vld [vmem:[#allocation10 + $0x4] sm:$0xf0]  ;;  %v1131_v63 = vld [vmem:[#allocation16 + $0x38] sm:$0xff] }
  0x37   :  { %v879_v62 = vor.u32 %v1085_v59, %v878_v58  ;;  %v1130_v3 = vld [vmem:[#allocation16 + $0x30] sm:$0xff]  ;;  %v888_v5 = vld [vmem:[#allocation10 + $0x18] sm:$0xf0]  ;;  %v1129_v7 = vld [vmem:[#allocation16 + $0x28] sm:$0xff] }
  0x38   :  { %239 = vmatpush.bf16.msra.mxu0 %v1071_v8  ;;  %439 = vmatpush.bf16.msra.mxu2 %v919_v31  ;;  %v1086_v4 = vld [vmem:[#allocation10 + $0x14] sm:$0xf]  ;;  %v1084_v8 = vld [vmem:[#allocation10 + $0x4] sm:$0xf]  ;;  %v1107_v17 = vld [vmem:[#allocation11 + $0x38] sm:$0xff] }
  0x39   :  { %321 = vmatpush.bf16.msra.mxu1 %v1079_v9  ;;  %v891_v6 = vor.u32 %v1086_v4, %v888_v5  ;;  %v880_v9 = vld [vmem:[#allocation10 + $0x8] sm:$0xf0]  ;;  %v1106_v18 = vld [vmem:[#allocation11 + $0x30] sm:$0xff]  ;;  %v1104_v27 = vld [vmem:[#allocation11 + $0x20] sm:$0xff] }
  0x3a   :  { %452 = vmatpush.bf16.msra.mxu3 %v923_v36  ;;  %v268_v19 = vld [vmem:[#allocation5 + $0x1] ss:$0 sm:$0xff]  ;;  %v1105_v20 = vld [vmem:[#allocation11 + $0x28] sm:$0xff]  ;;  %v1103_v28 = vld [vmem:[#allocation11 + $0x18] sm:$0xff] }
  0x3b   :  { %v1102_v29 = vld [vmem:[#allocation11 + $0x10] sm:$0xff]  ;;  %v1101_v30 = vld [vmem:[#allocation11 + $0x8] sm:$0xff]  ;;  %v1100_v31 = vld [vmem:[#allocation11] sm:$0xff] }
  0x3c   :  { %240 = vmatpush.bf16.msra.mxu0 %v1070_v10  ;;  %440 = vmatpush.bf16.msra.mxu2 %v911_v37  ;;  %v883_v10 = vor.u32 %v1084_v8, %v880_v9  ;;  %v1115_v32 = vld [vmem:[#allocation13 + $0x38] sm:$0xff]  ;;  %v1114_v34 = vld [vmem:[#allocation13 + $0x30] sm:$0xff]  ;;  %v1113_v36 = vld [vmem:[#allocation13 + $0x28] sm:$0xff] }
  0x3d   :  { %322 = vmatpush.bf16.msra.mxu1 %v1078_v11  ;;  %v1128_v11 = vld [vmem:[#allocation16 + $0x20] sm:$0xff]  ;;  %v351_v33 = vld [vmem:[#allocation5 + $0x2] ss:$8 sm:$0x3]  ;;  %v568_v8 = vld [vmem:[#allocation5 + $0x4] ss:$0 sm:$0xff] }
  0x3e   :  { %453 = vmatpush.bf16.msra.mxu3 %v915_v42  ;;  %v354_v35 = vperm.slane %v351_v33, 1  ;;  %v1112_v40 = vld [vmem:[#allocation13 + $0x20] sm:$0xff]  ;;  %v353_v47 = vperm.slane %v351_v33, 0  ;;  %v1123_v58 = vld [vmem:[#allocation14 + $0x38] sm:$0xff]  ;;  %v1122_v59 = vld [vmem:[#allocation14 + $0x30] sm:$0xff] }
  0x40   :  { %241 = vmatpush.bf16.msra.mxu0 %v1069_v12  ;;  %441 = vmatpush.bf16.msra.mxu2 %v903_v43  ;;  %v1127_v12 = vld [vmem:[#allocation16 + $0x18] sm:$0xff] }
  0x41   :  { %323 = vmatpush.bf16.msra.mxu1 %v1077_v15  ;;  %v1125_v15 = vld [vmem:[#allocation16 + $0x8] sm:$0xff]  ;;  %v1111_v43 = vld [vmem:[#allocation13 + $0x18] sm:$0xff] }
  0x42   :  { %454 = vmatpush.bf16.msra.mxu3 %v907_v48  ;;  %v1110_v48 = vld [vmem:[#allocation13 + $0x10] sm:$0xff] }
  0x44   :  { %242 = vmatpush.bf16.msra.mxu0 %v1068_v13  ;;  %442 = vmatpush.bf16.msra.mxu2 %v895_v49  ;;  %v1126_v13 = vld [vmem:[#allocation16 + $0x10] sm:$0xff] }
  0x45   :  { %324 = vmatpush.bf16.msra.mxu1 %v1076_v16  ;;  %v1124_v16 = vld [vmem:[#allocation16] sm:$0xff] }
  0x46   :  { %455 = vmatpush.bf16.msra.mxu3 %v899_v55 }
  0x47   :  { %243 = vmatmul.bf16.vlgmr.msra.gmra.mxu0 %v1509_v14  ;;  %v1121_v14 = vld [vmem:[#allocation14 + $0x28] sm:$0xff] }
  0x48   :  { %443 = vmatpush.bf16.msra.mxu2 %v887_v56  ;;  %535 = vmatpush.bf16.msrb.mxu0 %v1107_v17  ;;  %v1109_v56 = vld [vmem:[#allocation13 + $0x8] sm:$0xff]  ;;  %v788_v17 = vld [vmem:[#allocation5 + $0x5] ss:$0 sm:$0xff] }
  0x49   :  { %617 = vmatpush.bf16.msrb.mxu1 %v1115_v32 }
  0x4a   :  { %456 = vmatpush.bf16.msra.mxu3 %v891_v6  ;;  %v1117_v6 = vld [vmem:[#allocation14 + $0x8] sm:$0xff] }
  0x4c   :  { %444 = vmatpush.bf16.msra.mxu2 %v879_v62  ;;  %536 = vmatpush.bf16.msrb.mxu0 %v1106_v18  ;;  %v1118_v62 = vld [vmem:[#allocation14 + $0x10] sm:$0xff] }
  0x4d   :  { %618 = vmatpush.bf16.msrb.mxu1 %v1114_v34 }
  0x4e   :  { %457 = vmatpush.bf16.msra.mxu3 %v883_v10 }
  0x50   :  { %714 = vmatpush.bf16.msrb.mxu2 %v1131_v63  ;;  %537 = vmatpush.bf16.msrb.mxu0 %v1105_v20  ;;  %v486_v63 = vld [vmem:[#allocation5 + $0x3] ss:$0 sm:$0xff] }
  0x51   :  { %619 = vmatpush.bf16.msrb.mxu1 %v1113_v36 }
  0x52   :  { %775 = vmatpush.bf16.msrb.mxu3 %v1123_v58 }
  0x54   :  { %715 = vmatpush.bf16.msrb.mxu2 %v1130_v3  ;;  %538 = vmatpush.bf16.msrb.mxu0 %v1104_v27 }
  0x55   :  { %620 = vmatpush.bf16.msrb.mxu1 %v1112_v40 }
  0x56   :  { %776 = vmatpush.bf16.msrb.mxu3 %v1122_v59 }
  0x58   :  { %716 = vmatpush.bf16.msrb.mxu2 %v1129_v7  ;;  %539 = vmatpush.bf16.msrb.mxu0 %v1103_v28  ;;  %v1116_v7 = vld [vmem:[#allocation14] sm:$0xff] }
  0x59   :  { %621 = vmatpush.bf16.msrb.mxu1 %v1111_v43 }
  0x5a   :  { %777 = vmatpush.bf16.msrb.mxu3 %v1121_v14 }
  0x5c   :  { %717 = vmatpush.bf16.msrb.mxu2 %v1128_v11  ;;  %540 = vmatpush.bf16.msrb.mxu0 %v1102_v29 }
  0x5d   :  { %622 = vmatpush.bf16.msrb.mxu1 %v1110_v48 }
  0x60   :  { %718 = vmatpush.bf16.msrb.mxu2 %v1127_v12  ;;  %541 = vmatpush.bf16.msrb.mxu0 %v1101_v30 }
  0x61   :  { %623 = vmatpush.bf16.msrb.mxu1 %v1109_v56 }
  0x64   :  { %719 = vmatpush.bf16.msrb.mxu2 %v1126_v13  ;;  %542 = vmatpush.bf16.msrb.mxu0 %v1100_v31 }
  0x68   :  { %720 = vmatpush.bf16.msrb.mxu2 %v1125_v15 }
  0x6c   :  { %721 = vmatpush.bf16.msrb.mxu2 %v1124_v16 }
  0xc4   :  { %v244_v57 = vpop.f32.mrf.mxu0 }
  0xc5   :  { %v245_v60 = vadd.f32 %v244_v57, %v186_v54  ;;  %v1108_v57 = vld [vmem:[#allocation13] sm:$0xff] }
  0xc6   :  { %624 = vmatpush.bf16.msrb.mxu1 %v1108_v57 }
  0xc7   :  { %v249_v61 = vmul.f32 0.01, %v245_v60  ;;  %vm248_vm0 = vcmp.ge.f32.partialorder %v245_v60, 0.0 }
  0xc9   :  { %v250_v0 = vsel %vm248_vm0, %v245_v60, %v249_v61  ;;  %v1120_v60 = vld [vmem:[#allocation14 + $0x20] sm:$0xff]  ;;  %v1119_v61 = vld [vmem:[#allocation14 + $0x18] sm:$0xff] }
  0xca   :  { %v251_v1 = vpack.c.bf16 %v250_v0, %v250_v0  ;;  %778 = vmatpush.bf16.msrb.mxu3 %v1120_v60 }
  0xcc   :  { %v246_v2 = vpop.f32.mrf.mxu0  ;;  %325 = vmatmul.bf16.vlgmr.msra.gmra.mxu1 %v251_v1 }
  0xce   :  { %779 = vmatpush.bf16.msrb.mxu3 %v1119_v61 }
  0xd2   :  { %780 = vmatpush.bf16.msrb.mxu3 %v1118_v62 }
  0xd6   :  { %781 = vmatpush.bf16.msrb.mxu3 %v1117_v6 }
  0xda   :  { %782 = vmatpush.bf16.msrb.mxu3 %v1116_v7 }
 0x149   :  { %v326_v21 = vpop.f32.mrf.mxu1 }
 0x14a   :  { %v327_v22 = vadd.f32 %v326_v21, %v268_v19 }
 0x14c   :  { %vm330_vm1 = vcmp.ge.f32.partialorder %v327_v22, 0.0  ;;  %v331_v23 = vmul.f32 0.01, %v327_v22 }
 0x14e   :  { %v332_v24 = vsel %vm330_vm1, %v327_v22, %v331_v23 }
 0x14f   :  { %v333_v25 = vpack.c.bf16 %v332_v24, %v332_v24 }
 0x151   :  { %v328_v26 = vpop.f32.mrf.mxu1  ;;  %445 = vmatmul.bf16.vlgmr.msra.gmra.mxu2 %v333_v25  ;;  %458 = vmatmul.bf16.vlgmr.msra.gmra.mxu3 %v333_v25 }
 0x161   :  { %722 = vmatmul.bf16.vlgmr.msrb.gmra.mxu2 %v333_v25 }
 0x1d4   :  { %v446_v37 = vpop.f32.mrf.mxu2  ;;  %v459_v38 = vpop.f32.mrf.mxu3 }
 0x1d5   :  { %v460_v39 = vadd.f32 %v459_v38, %v354_v35  ;;  %v447_v50 = vadd.f32 %v446_v37, %v353_v47 }
 0x1d7   :  { %v464_v41 = vmul.f32 0.5, %v460_v39 }
 0x1d9   :  { %v465_v42 = vmul.f32 1.442695, %v464_v41 }
 0x1db   :  { %1146 = vpow2.f32 %v465_v42 }
 0x1dc   :  { %v448_v44 = vpop.f32.mrf.mxu2  ;;  %v461_v45 = vpop.f32.mrf.mxu3 }
 0x1e1   :  { %v1147_v49 = vpop.eup %1146 }
 0x1e2   :  { %v467_v51 = vmul.f32 %v1147_v49, %v463_v46 }
 0x1e4   :  { %v723_v52 = vpop.f32.mrf.mxu2  ;;  %v468_v53 = vadd.f32 %v467_v51, %v447_v50 }
 0x1e6   :  { %v469_v54 = vpack.c.bf16 %v468_v53, %v468_v53 }
 0x1e8   :  { %543 = vmatmul.bf16.vlgmr.msrb.gmra.mxu0 %v469_v54 }
 0x1ec   :  { %v725_v55 = vpop.f32.mrf.mxu2 }
 0x265   :  { %v544_v0 = vpop.f32.mrf.mxu0 }
 0x266   :  { %v545_v1 = vadd.f32 %v544_v0, %v486_v63 }
 0x268   :  { %vm548_vm2 = vcmp.ge.f32.partialorder %v545_v1, 0.0  ;;  %v549_v2 = vmul.f32 0.01, %v545_v1 }
 0x26a   :  { %v550_v3 = vsel %vm548_vm2, %v545_v1, %v549_v2 }
 0x26b   :  { %v551_v4 = vpack.c.bf16 %v550_v3, %v550_v3 }
 0x26d   :  { %v546_v5 = vpop.f32.mrf.mxu0  ;;  %625 = vmatmul.bf16.vlgmr.msrb.gmra.mxu1 %v551_v4 }
 0x2ea   :  { %v626_v9 = vpop.f32.mrf.mxu1 }
 0x2eb   :  { %v627_v10 = vadd.f32 %v626_v9, %v568_v8 }
 0x2ed   :  { %vm630_vm3 = vcmp.ge.f32.partialorder %v627_v10, 0.0  ;;  %v631_v11 = vmul.f32 0.01, %v627_v10 }
 0x2ef   :  { %v632_v12 = vsel %vm630_vm3, %v627_v10, %v631_v11 }
 0x2f0   :  { %v633_v13 = vpack.c.bf16 %v632_v12, %v632_v12 }
 0x2f2   :  { %v628_v15 = vpop.f32.mrf.mxu1  ;;  %783 = vmatmul.bf16.vlgmr.msrb.gmra.mxu3 %v633_v13 }
 0x375   :  { %v784_v16 = vpop.f32.mrf.mxu3 }
 0x376   :  { %v785_v18 = vadd.f32 %v784_v16, %v723_v52 }
 0x378   :  { %v789_v19 = vadd.f32 %v788_v17, %v785_v18 }
 0x37a   :  { %790 = vst [vmem:[#allocation17] sm:$0xff] %v789_v19 }
 0x37b   :  { %801 = dma.vmem_to_hbm [thread:$0]  %s797_s8, 128, %s799_s29, [#allocation4]  }
 0x37d   :  { %v786_v20 = vpop.f32.mrf.mxu3 }
 0x37e   :  { %1398 = dma.done.wait [#allocation4], 128  }
 0x37f   :  { %1399 = vsyncadd [#allocation4], 4294967168 }
 0x380   :  { %806 = vsyncpa [#allocation3], 1 }
 0x381   :  { %807 = vsyncpa [#allocation6], 1 }
 0x382   :  { %808 = vsyncpa [#allocation9], 1 }
 0x383   :  { %809 = vsyncpa [#allocation12], 1 }
 0x384   :  { %810 = vsyncpa [#allocation15], 1 }
 0x385   :  { %811 = vsyncpa [#allocation4], 1 }

</bundles_post_ra>
